<compile_context>
chip_gen: v6e
topology: v6e:2x2x1
jax: 0.10.0
libtpu: 0.0.40
codegen_flags: <defaults>
</compile_context>

<pallas_src>
import jax
import jax.numpy as jnp
from jax.experimental import pallas as pl
from jax.experimental.pallas import tpu as pltpu


# ------------------------------ kernels -------------------------------------
def _vpu_kernel(C, C_out, Bt):
    # x_ref:     (Bt, C,    t_s, 128)  VMEM activation slab(s)
    # coord_ref: (2,        t_s, 128)  VMEM per-step coord tile [xx; yy]
    # w_ref:     (C_out, C+3)          SMEM packed [W_main | w_xx | w_yy | bias]
    # o_ref:     (Bt, C_out, t_s, 128) VMEM output slab(s)
    def kernel(x_ref, coord_ref, w_ref, o_ref):
        xx = coord_ref[0]                       # (t_s, 128) f32
        yy = coord_ref[1]                       # (t_s, 128) f32
        for b in range(Bt):
            for n in range(C_out):
                acc = (w_ref[n, C] * xx
                       + w_ref[n, C + 1] * yy
                       + w_ref[n, C + 2])       # coord + bias term
                for c in range(C):
                    acc = acc + w_ref[n, c] * x_ref[b, c, :, :]
                o_ref[b, n, :, :] = acc.astype(o_ref.dtype)
    return kernel


def _mxu_kernel(C):
    # x_ref:     (C, t_hw)      VMEM
    # coord_ref: (2, t_hw)      VMEM per-step coord tile
    # w_ref:     (C_out, C+3)   VMEM (resident, block index constant)
    # o_ref:     (C_out, t_hw)  VMEM (lane-dense output)
    def kernel(x_ref, coord_ref, w_ref, o_ref):
        x = x_ref[...]
        w = w_ref[...]
        acc = jnp.dot(w[:, :C].astype(x.dtype), x,
                      preferred_element_type=jnp.float32)        # (C_out, t_hw)
        xx = coord_ref[0:1, :]
        yy = coord_ref[1:2, :]
        acc = acc + w[:, C:C + 1] * xx + w[:, C + 1:C + 2] * yy + w[:, C + 2:C + 3]
        o_ref[...] = acc.astype(o_ref.dtype)
    return kernel


# --------------------------- tiling heuristics -------------------------------
def _vpu_spatial_plan(HW):
    """Return (HWp, S, t_s): padded spatial, #128-lane rows, rows per step."""
    HWp = ((HW + 127) // 128) * 128
    S = HWp // 128
    if S <= 64:
        return HWp, S, S
    t = 64
    while t >= 8 and S % t != 0:
        t -= 8
    if t >= 8:
        return HWp, S, t
    # No multiple-of-8 divisor <= 64: re-pad S up to a multiple of 8 so one exists.
    S = ((S + 7) // 8) * 8
    HWp = S * 128
    t = 64
    while S % t != 0:
        t -= 8
    return HWp, S, t


def _pick_batch_fold(B, C, t_s, S, target_bytes=1 << 20):
    """Fold Bt batch elements per step so each step moves ~target_bytes of x."""
    per_b = C * t_s * 128 * 4
    bt = max(1, min(B, target_bytes // max(per_b, 1)))
    while B % bt != 0:
        bt -= 1
    # Expose >= 2 grid steps when possible (v7x has 2 TensorCores per chip).
    if bt == B and S == t_s and B > 1:
        bt = B // 2
        while B % bt != 0:
            bt -= 1
    return max(bt, 1)


def _pick_hw_tile(HWp, C, C_out, budget=4 << 20):
    """Largest lane-dense tile (prefer multiple of 256 for the MXU) within budget."""
    per_col = (C + C_out) * 4 * 2                   # double-buffered in + out, f32
    cap = max(128, min(HWp, budget // max(per_col, 1)))
    best = 128                                      # 128 always divides HWp
    t = (cap // 128) * 128
    while t >= 128:
        if HWp % t == 0:
            if t % 256 == 0:
                return t
            if best == 128:
                best = t
        t -= 128
    return best


# ------------------------------- glue (JAX) ----------------------------------
def patch_descriptor_forward(p, conv_weight, conv_bias):
    """p: (B, C, H, W) NCHW.  conv_weight: (C_out, C+2, 1, 1).  conv_bias: (C_out,)."""
    B, C, H, W = p.shape
    C_out = conv_weight.shape[0]
    HW = H * W

    # AddCoords channels (xx varies along H, yy along W, both in [-1, 1]).
    # TODO(synk): some AddCoords variants swap which coordinate varies along H vs W;
    # flip the two rows of `coord` when loading pretrained weights of that convention.
    xs = (2.0 * jnp.arange(H, dtype=jnp.float32) / max(H - 1, 1)) - 1.0
    ys = (2.0 * jnp.arange(W, dtype=jnp.float32) / max(W - 1, 1)) - 1.0
    coord = jnp.stack(
        [jnp.broadcast_to(xs[:, None], (H, W)).reshape(HW),
         jnp.broadcast_to(ys[None, :], (H, W)).reshape(HW)], axis=0)   # (2, HW)

    x = p.reshape(B, C, HW)                          # free view of NCHW

    # Packed parameters: [W_main | w_xx | w_yy | bias] -> (C_out, C+3) f32.
    w_packed = jnp.concatenate(
        [conv_weight.reshape(C_out, C + 2).astype(jnp.float32),
         conv_bias.reshape(C_out, 1).astype(jnp.float32)], axis=1)

    use_mxu = C >= 16
    common_params = pltpu.CompilerParams(
        dimension_semantics=("parallel", "parallel"),
        vmem_limit_bytes=32 * 1024 * 1024,
    )

    if not use_mxu:
        # ---- tiny-C VPU path: (S, 128) lane-dense slabs, weights in SMEM ----
        HWp, S, t_s = _vpu_spatial_plan(HW)
        if HWp != HW:
            # TODO(synk): a ragged last block would avoid this extra HBM pass.
            x = jnp.pad(x, ((0, 0), (0, 0), (0, HWp - HW)))
            coord = jnp.pad(coord, ((0, 0), (0, HWp - HW)))
        Bt = _pick_batch_fold(B, C, t_s, S)

        x4 = x.reshape(B, C, S, 128)                 # free view
        coord3 = coord.reshape(2, S, 128)

        out = pl.pallas_call(
            _vpu_kernel(C, C_out, Bt),
            out_shape=jax.ShapeDtypeStruct((B, C_out, S, 128), p.dtype),
            grid_spec=pltpu.PrefetchScalarGridSpec(
                num_scalar_prefetch=0,
                grid=(B // Bt, S // t_s),
                in_specs=[
                    pl.BlockSpec((Bt, C, t_s, 128), lambda b, j: (b, 0, j, 0)),
                    pl.BlockSpec((2, t_s, 128), lambda b, j: (0, j, 0)),
                    pl.BlockSpec(memory_space=pltpu.MemorySpace.SMEM),
                ],
                out_specs=pl.BlockSpec((Bt, C_out, t_s, 128),
                                       lambda b, j: (b, 0, j, 0)),
            ),
            compiler_params=common_params,
        )(x4, coord3, w_packed)
        out = out.reshape(B, C_out, HWp)
    else:
        # ---- mid/large-C MXU path: plain dot over channels, coords in epilogue ----
        HWp = ((HW + 127) // 128) * 128
        if HWp != HW:
            x = jnp.pad(x, ((0, 0), (0, 0), (0, HWp - HW)))
            coord = jnp.pad(coord, ((0, 0), (0, HWp - HW)))
        t_hw = _pick_hw_tile(HWp, C, C_out)

        out = pl.pallas_call(
            _mxu_kernel(C),
            out_shape=jax.ShapeDtypeStruct((B, C_out, HWp), p.dtype),
            grid_spec=pltpu.PrefetchScalarGridSpec(
                num_scalar_prefetch=0,
                grid=(B, HWp // t_hw),
                in_specs=[
                    pl.BlockSpec((None, C, t_hw), lambda b, j: (b, 0, j)),
                    pl.BlockSpec((2, t_hw), lambda b, j: (0, j)),
                    pl.BlockSpec((C_out, C + 3), lambda b, j: (0, 0)),
                ],
                out_specs=pl.BlockSpec((None, C_out, t_hw), lambda b, j: (b, 0, j)),
            ),
            compiler_params=common_params,
        )(x, coord, w_packed)

    if HWp != HW:
        out = out[:, :, :HW]
    return out.reshape(B, C_out, H, W)               # already NCHW, no transpose


# ----------------------------- reference & demo ------------------------------
def _reference(p, conv_weight, conv_bias):
    B, C, H, W = p.shape
    xs = (2.0 * jnp.arange(H, dtype=jnp.float32) / max(H - 1, 1)) - 1.0
    ys = (2.0 * jnp.arange(W, dtype=jnp.float32) / max(W - 1, 1)) - 1.0
    xx = jnp.broadcast_to(xs[:, None], (H, W))
    yy = jnp.broadcast_to(ys[None, :], (H, W))
    p_aug = jnp.concatenate(
        [p,
         jnp.broadcast_to(xx[None, None], (B, 1, H, W)),
         jnp.broadcast_to(yy[None, None], (B, 1, H, W))], axis=1)
    out = jnp.einsum("bchw,oc->bohw", p_aug, conv_weight[:, :, 0, 0])
    return out + conv_bias[None, :, None, None]


if __name__ == "__main__":
    def run_case(key, dim, gamma_d, B, H, W):
        c_in_aug = dim + 2                           # CoordConv adds 2 channels
        c_out = dim // gamma_d
        k_x, k_w, k_b = jax.random.split(key, 3)
        p = jax.random.normal(k_x, (B, dim, H, W), dtype=jnp.float32)
        bound = 1.0 / (c_in_aug ** 0.5)              # kaiming-uniform-like bound
        conv_weight = jax.random.uniform(
            k_w, (c_out, c_in_aug, 1, 1), jnp.float32, -bound, bound)
        conv_bias = jax.random.uniform(k_b, (c_out,), jnp.float32, -bound, bound)

        phi_p = patch_descriptor_forward(p, conv_weight, conv_bias)
        jax.block_until_ready(phi_p)
        assert phi_p.shape == (B, c_out, H, W), phi_p.shape

        ref = _reference(p, conv_weight, conv_bias)
        err = float(jnp.max(jnp.abs(phi_p - ref)))
        assert jnp.allclose(phi_p, ref, atol=1e-5, rtol=1e-5), err

    key = jax.random.PRNGKey(0)
    k1, k2 = jax.random.split(key)
    run_case(k1, dim=4, gamma_d=2, B=2, H=16, W=16)    # tiny-C VPU path
    run_case(k2, dim=32, gamma_d=4, B=2, H=16, W=16)   # MXU path (C >= 16)
    print("KERNEL_OK")
</pallas_src>

<mosaic_0001>
module attributes {stable_mosaic.version = 11 : i64} {
  func.func @kernel(%arg0: i32, %arg1: i32, %arg2: memref<1x4x2x128xf32, #tpu.memory_space<vmem>>, %arg3: memref<2x2x128xf32, #tpu.memory_space<vmem>>, %arg4: memref<2x7xf32, #tpu.memory_space<smem>>, %arg5: memref<1x2x2x128xf32, #tpu.memory_space<vmem>>) attributes {dimension_semantics = [#tpu.dimension_semantics<parallel>, #tpu.dimension_semantics<parallel>], iteration_bounds = array<i64: 2, 1>, scalar_prefetch = 0 : i64, scratch_operands = 0 : i64, tpu.core_type = #tpu.core_type<tc>, window_params = [{transform_indices = @transform_0, window_bounds = array<i64: 1, 4, 2, 128>}, {transform_indices = @transform_1, window_bounds = array<i64: 2, 2, 128>}, {transform_indices = @transform_2, window_bounds = array<i64: 2, 7>}, {transform_indices = @transform_3, window_bounds = array<i64: 1, 2, 2, 128>}]} {
    %c0 = arith.constant 0 : index
    %c0_0 = arith.constant 0 : index
    %c0_1 = arith.constant 0 : index
    %0 = vector.load %arg3[%c0, %c0_0, %c0_1] : memref<2x2x128xf32, #tpu.memory_space<vmem>>, vector<1x2x128xf32>
    %1 = vector.shape_cast %0 : vector<1x2x128xf32> to vector<2x128xf32>
    %c1 = arith.constant 1 : index
    %c0_2 = arith.constant 0 : index
    %c0_3 = arith.constant 0 : index
    %2 = vector.load %arg3[%c1, %c0_2, %c0_3] : memref<2x2x128xf32, #tpu.memory_space<vmem>>, vector<1x2x128xf32>
    %3 = vector.shape_cast %2 : vector<1x2x128xf32> to vector<2x128xf32>
    %c0_4 = arith.constant 0 : index
    %c4 = arith.constant 4 : index
    %4 = memref.load %arg4[%c0_4, %c4] : memref<2x7xf32, #tpu.memory_space<smem>>
    %5 = vector.broadcast %4 : f32 to vector<2x128xf32>
    %6 = arith.mulf %5, %1 : vector<2x128xf32>
    %c0_5 = arith.constant 0 : index
    %c5 = arith.constant 5 : index
    %7 = memref.load %arg4[%c0_5, %c5] : memref<2x7xf32, #tpu.memory_space<smem>>
    %8 = vector.broadcast %7 : f32 to vector<2x128xf32>
    %9 = arith.mulf %8, %3 : vector<2x128xf32>
    %10 = arith.addf %6, %9 : vector<2x128xf32>
    %c0_6 = arith.constant 0 : index
    %c6 = arith.constant 6 : index
    %11 = memref.load %arg4[%c0_6, %c6] : memref<2x7xf32, #tpu.memory_space<smem>>
    %12 = vector.broadcast %11 : f32 to vector<2x128xf32>
    %13 = arith.addf %10, %12 : vector<2x128xf32>
    %c0_7 = arith.constant 0 : index
    %c0_8 = arith.constant 0 : index
    %14 = memref.load %arg4[%c0_7, %c0_8] : memref<2x7xf32, #tpu.memory_space<smem>>
    %c0_9 = arith.constant 0 : index
    %c0_10 = arith.constant 0 : index
    %c0_11 = arith.constant 0 : index
    %c0_12 = arith.constant 0 : index
    %15 = vector.load %arg2[%c0_9, %c0_10, %c0_11, %c0_12] : memref<1x4x2x128xf32, #tpu.memory_space<vmem>>, vector<1x1x2x128xf32>
    %16 = vector.shape_cast %15 : vector<1x1x2x128xf32> to vector<2x128xf32>
    %17 = vector.broadcast %14 : f32 to vector<2x128xf32>
    %18 = arith.mulf %17, %16 : vector<2x128xf32>
    %19 = arith.addf %13, %18 : vector<2x128xf32>
    %c0_13 = arith.constant 0 : index
    %c1_14 = arith.constant 1 : index
    %20 = memref.load %arg4[%c0_13, %c1_14] : memref<2x7xf32, #tpu.memory_space<smem>>
    %c0_15 = arith.constant 0 : index
    %c1_16 = arith.constant 1 : index
    %c0_17 = arith.constant 0 : index
    %c0_18 = arith.constant 0 : index
    %21 = vector.load %arg2[%c0_15, %c1_16, %c0_17, %c0_18] : memref<1x4x2x128xf32, #tpu.memory_space<vmem>>, vector<1x1x2x128xf32>
    %22 = vector.shape_cast %21 : vector<1x1x2x128xf32> to vector<2x128xf32>
    %23 = vector.broadcast %20 : f32 to vector<2x128xf32>
    %24 = arith.mulf %23, %22 : vector<2x128xf32>
    %25 = arith.addf %19, %24 : vector<2x128xf32>
    %c0_19 = arith.constant 0 : index
    %c2 = arith.constant 2 : index
    %26 = memref.load %arg4[%c0_19, %c2] : memref<2x7xf32, #tpu.memory_space<smem>>
    %c0_20 = arith.constant 0 : index
    %c2_21 = arith.constant 2 : index
    %c0_22 = arith.constant 0 : index
    %c0_23 = arith.constant 0 : index
    %27 = vector.load %arg2[%c0_20, %c2_21, %c0_22, %c0_23] : memref<1x4x2x128xf32, #tpu.memory_space<vmem>>, vector<1x1x2x128xf32>
    %28 = vector.shape_cast %27 : vector<1x1x2x128xf32> to vector<2x128xf32>
    %29 = vector.broadcast %26 : f32 to vector<2x128xf32>
    %30 = arith.mulf %29, %28 : vector<2x128xf32>
    %31 = arith.addf %25, %30 : vector<2x128xf32>
    %c0_24 = arith.constant 0 : index
    %c3 = arith.constant 3 : index
    %32 = memref.load %arg4[%c0_24, %c3] : memref<2x7xf32, #tpu.memory_space<smem>>
    %c0_25 = arith.constant 0 : index
    %c3_26 = arith.constant 3 : index
    %c0_27 = arith.constant 0 : index
    %c0_28 = arith.constant 0 : index
    %33 = vector.load %arg2[%c0_25, %c3_26, %c0_27, %c0_28] : memref<1x4x2x128xf32, #tpu.memory_space<vmem>>, vector<1x1x2x128xf32>
    %34 = vector.shape_cast %33 : vector<1x1x2x128xf32> to vector<2x128xf32>
    %35 = vector.broadcast %32 : f32 to vector<2x128xf32>
    %36 = arith.mulf %35, %34 : vector<2x128xf32>
    %37 = arith.addf %31, %36 : vector<2x128xf32>
    %c0_29 = arith.constant 0 : index
    %c0_30 = arith.constant 0 : index
    %c0_31 = arith.constant 0 : index
    %c0_32 = arith.constant 0 : index
    %38 = vector.load %arg5[%c0_29, %c0_30, %c0_31, %c0_32] : memref<1x2x2x128xf32, #tpu.memory_space<vmem>>, vector<1x1x2x128xf32>
    %39 = vector.shape_cast %38 : vector<1x1x2x128xf32> to vector<2x128xf32>
    %40 = vector.shape_cast %37 : vector<2x128xf32> to vector<1x1x2x128xf32>
    tpu.vector_store %arg5[%c0_29, %c0_30, %c0_31, %c0_32], %40 {strides = array<i32>} : memref<1x2x2x128xf32, #tpu.memory_space<vmem>>, vector<1x1x2x128xf32>,
    %c1_33 = arith.constant 1 : index
    %c4_34 = arith.constant 4 : index
    %41 = memref.load %arg4[%c1_33, %c4_34] : memref<2x7xf32, #tpu.memory_space<smem>>
    %42 = vector.broadcast %41 : f32 to vector<2x128xf32>
    %43 = arith.mulf %42, %1 : vector<2x128xf32>
    %c1_35 = arith.constant 1 : index
    %c5_36 = arith.constant 5 : index
    %44 = memref.load %arg4[%c1_35, %c5_36] : memref<2x7xf32, #tpu.memory_space<smem>>
    %45 = vector.broadcast %44 : f32 to vector<2x128xf32>
    %46 = arith.mulf %45, %3 : vector<2x128xf32>
    %47 = arith.addf %43, %46 : vector<2x128xf32>
    %c1_37 = arith.constant 1 : index
    %c6_38 = arith.constant 6 : index
    %48 = memref.load %arg4[%c1_37, %c6_38] : memref<2x7xf32, #tpu.memory_space<smem>>
    %49 = vector.broadcast %48 : f32 to vector<2x128xf32>
    %50 = arith.addf %47, %49 : vector<2x128xf32>
    %c1_39 = arith.constant 1 : index
    %c0_40 = arith.constant 0 : index
    %51 = memref.load %arg4[%c1_39, %c0_40] : memref<2x7xf32, #tpu.memory_space<smem>>
    %c0_41 = arith.constant 0 : index
    %c0_42 = arith.constant 0 : index
    %c0_43 = arith.constant 0 : index
    %c0_44 = arith.constant 0 : index
    %52 = vector.load %arg2[%c0_41, %c0_42, %c0_43, %c0_44] : memref<1x4x2x128xf32, #tpu.memory_space<vmem>>, vector<1x1x2x128xf32>
    %53 = vector.shape_cast %52 : vector<1x1x2x128xf32> to vector<2x128xf32>
    %54 = vector.broadcast %51 : f32 to vector<2x128xf32>
    %55 = arith.mulf %54, %53 : vector<2x128xf32>
    %56 = arith.addf %50, %55 : vector<2x128xf32>
    %c1_45 = arith.constant 1 : index
    %c1_46 = arith.constant 1 : index
    %57 = memref.load %arg4[%c1_45, %c1_46] : memref<2x7xf32, #tpu.memory_space<smem>>
    %c0_47 = arith.constant 0 : index
    %c1_48 = arith.constant 1 : index
    %c0_49 = arith.constant 0 : index
    %c0_50 = arith.constant 0 : index
    %58 = vector.load %arg2[%c0_47, %c1_48, %c0_49, %c0_50] : memref<1x4x2x128xf32, #tpu.memory_space<vmem>>, vector<1x1x2x128xf32>
    %59 = vector.shape_cast %58 : vector<1x1x2x128xf32> to vector<2x128xf32>
    %60 = vector.broadcast %57 : f32 to vector<2x128xf32>
    %61 = arith.mulf %60, %59 : vector<2x128xf32>
    %62 = arith.addf %56, %61 : vector<2x128xf32>
    %c1_51 = arith.constant 1 : index
    %c2_52 = arith.constant 2 : index
    %63 = memref.load %arg4[%c1_51, %c2_52] : memref<2x7xf32, #tpu.memory_space<smem>>
    %c0_53 = arith.constant 0 : index
    %c2_54 = arith.constant 2 : index
    %c0_55 = arith.constant 0 : index
    %c0_56 = arith.constant 0 : index
    %64 = vector.load %arg2[%c0_53, %c2_54, %c0_55, %c0_56] : memref<1x4x2x128xf32, #tpu.memory_space<vmem>>, vector<1x1x2x128xf32>
    %65 = vector.shape_cast %64 : vector<1x1x2x128xf32> to vector<2x128xf32>
    %66 = vector.broadcast %63 : f32 to vector<2x128xf32>
    %67 = arith.mulf %66, %65 : vector<2x128xf32>
    %68 = arith.addf %62, %67 : vector<2x128xf32>
    %c1_57 = arith.constant 1 : index
    %c3_58 = arith.constant 3 : index
    %69 = memref.load %arg4[%c1_57, %c3_58] : memref<2x7xf32, #tpu.memory_space<smem>>
    %c0_59 = arith.constant 0 : index
    %c3_60 = arith.constant 3 : index
    %c0_61 = arith.constant 0 : index
    %c0_62 = arith.constant 0 : index
    %70 = vector.load %arg2[%c0_59, %c3_60, %c0_61, %c0_62] : memref<1x4x2x128xf32, #tpu.memory_space<vmem>>, vector<1x1x2x128xf32>
    %71 = vector.shape_cast %70 : vector<1x1x2x128xf32> to vector<2x128xf32>
    %72 = vector.broadcast %69 : f32 to vector<2x128xf32>
    %73 = arith.mulf %72, %71 : vector<2x128xf32>
    %74 = arith.addf %68, %73 : vector<2x128xf32>
    %c0_63 = arith.constant 0 : index
    %c1_64 = arith.constant 1 : index
    %c0_65 = arith.constant 0 : index
    %c0_66 = arith.constant 0 : index
    %75 = vector.load %arg5[%c0_63, %c1_64, %c0_65, %c0_66] : memref<1x2x2x128xf32, #tpu.memory_space<vmem>>, vector<1x1x2x128xf32>
    %76 = vector.shape_cast %75 : vector<1x1x2x128xf32> to vector<2x128xf32>
    %77 = vector.shape_cast %74 : vector<2x128xf32> to vector<1x1x2x128xf32>
    tpu.vector_store %arg5[%c0_63, %c1_64, %c0_65, %c0_66], %77 {strides = array<i32>} : memref<1x2x2x128xf32, #tpu.memory_space<vmem>>, vector<1x1x2x128xf32>,
    return
  }
  func.func @transform_0(%arg0: i32, %arg1: i32) -> (i32, i32, i32, i32) {
    %c0_i32 = arith.constant 0 : i32
    %c0_i32_0 = arith.constant 0 : i32
    %c0_i32_1 = arith.constant 0 : i32
    return %arg0, %c0_i32, %arg1, %c0_i32_0 : i32, i32, i32, i32
  }
  func.func @transform_1(%arg0: i32, %arg1: i32) -> (i32, i32, i32) {
    %c0_i32 = arith.constant 0 : i32
    %c0_i32_0 = arith.constant 0 : i32
    %c0_i32_1 = arith.constant 0 : i32
    return %c0_i32, %arg1, %c0_i32_0 : i32, i32, i32
  }
  func.func @transform_2(%arg0: i32, %arg1: i32) -> (i32, i32) {
    %c0_i32 = arith.constant 0 : i32
    %c0_i32_0 = arith.constant 0 : i32
    %c0_i32_1 = arith.constant 0 : i32
    return %c0_i32, %c0_i32_0 : i32, i32
  }
  func.func @transform_3(%arg0: i32, %arg1: i32) -> (i32, i32, i32, i32) {
    %c0_i32 = arith.constant 0 : i32
    %c0_i32_0 = arith.constant 0 : i32
    %c0_i32_1 = arith.constant 0 : i32
    return %arg0, %c0_i32, %arg1, %c0_i32_0 : i32, i32, i32, i32
  }
}

</mosaic_0001>

<bundles_post_ra>
// kernel: tpu_custom_call.1
= control target key start
LH: loop header
LB: loop body
LE: loop exit
PB: predicated region body
PF: predicated region fallthrough
CT: control target
= control target key end

     0   :  { %8 = vsyncpa [#allocation3], 0  ;;  %s965_s0 = inlined_call_operand.hbm [shape: f32[2,4,2,128], index: 0, kind: input, shape index: {}]   ;;  %s966_s1 = inlined_call_operand.hbm [shape: f32[2,2,128], index: 1, kind: input, shape index: {}]   ;;  %s967_s2 = inlined_call_operand.vmem [shape: f32[2,7], index: 2, kind: input, shape index: {}]   ;;  %s968_s3 = inlined_call_operand.hbm [shape: f32[2,2,2,128], index: 3, kind: output, shape index: {}]  }
   0x1   :  { %10 = vsyncpa [#allocation3 + $0x1], 0 }
   0x2   :  { %11 = vsyncpa [#allocation7], 0 }
   0x3   :  { %12 = vsyncpa [#allocation5], 0 }
   0x4   :  { %13 = vsyncpa [#allocation4], 0 }
   0x5   :  { %15 = vsyncpa [#allocation4 + $0x1], 0  ;;  %s750_s12 = smov 0   ;;  %s752_s13 = smov 0  }
   0x6   :  { %s754_s14 = smov 0   ;;  %s756_s15 = smov 0  }
   0x7   :  { %s758_s16 = smov 0   ;;  %s760_s17 = smov 0  }
   0x8 LB: > { %s435_s18 = sadd.s32 4294967295, %s720_s17   ;;  %s436_s19 = sadd.s32 4294967294, %s720_s17   ;;  %s720_s17 = sphi %s760_s17, %s21_s17   ;;  %s716_s16 = sphi %s758_s16, %s985_s16   ;;  %s712_s15 = sphi %s756_s15, %s984_s15   ;;  %s708_s14 = sphi %s754_s14, %s983_s14   ;;  %s704_s13 = sphi %s752_s13, %s982_s13   ;;  %s700_s12 = sphi %s750_s12, %s981_s12  }
   0x9   : > { %p55_p0 = scmp.ne.s32.totalorder %s704_s13, %s700_s12  ;;  %p784_p1 = scmp.eq.s32.totalorder %s435_s18, 0 }
   0xa   : > { %p788_p2 = scmp.eq.s32.totalorder %s435_s18, 1  ;;  %p134_p3 = scmp.eq.s32.totalorder %s436_s19, 1 }
   0xb   : > { %p794_p4 = por %p784_p1, %p55_p0  ;;  %p437_p5 = scmp.ge.s32.totalorder %s720_s17, 1 }
   0xc   : > { %p799_p6 = por %p134_p3, %p55_p0  ;;  %p141_p7 = scmp.lt.s32.totalorder %s720_s17, 3 }
   0xd   : > { %s722_s25 = smov [#allocation6]   ;;  %s169_s29 = sshll.u32 %s967_s2, 4  ;;  %s170_s29 = int_to_ptr.vmem [resolvable:$true] %s169_s29 }
   0xe   : > { %s973_s23 = scalar_select %p799_p6, 1, 0 }
   0xf   : > { %p804_p8 = pnand %p437_p5, %p141_p7  ;;  %s155_s26 = sshll.u32 %s722_s25, 4  ;;  %s156_s26 = int_to_ptr.vmem [resolvable:$true] %s155_s26 }
  0x10   : > { %s574_s4 = scalar_lea.vmem %s156_s26, 64  ;;  %p582_p5 = scmp.lt.s32.totalorder %s156_s26, %s156_s26 }
  0x11   : > { %p488_p9 = pneg %p804_p8  ;;  %p575_p13 = scmp.ne.s32.totalorder %s156_s26, %s574_s4 }
  0x12   : > { %p583_p7 = scmp.lt.s32.totalorder %s574_s4, %s574_s4 }
  0x13   : > { %p816_p11 = pnand %p488_p9, %p784_p1 }
  0x14   : > { %p584_p10 = por %p583_p7, %p582_p5 }
  0x15   : > { %p565_p12 = pneg %p816_p11 }
  0x17   : > { %p577_p0 = pnand %p575_p13, %p565_p12 }
  0x19   : > { %p578_p3 = pneg %p577_p0 }
  0x1b   : > { %p585_p6 = pnand %p584_p10, %p578_p3 }
  0x1d   : > { %588 = shalt.err (!%p585_p6)
}
  0x1e   : > { %s969_s5 = smov 32   ;;  %s724_s6 = smov 2  }
  0x1f   : > { %491 = dma.hbm_to_vmem [thread:$0]  (!%p816_p11), %s966_s1, 64, %s156_s26, [#allocation7], %s969_s5, %s969_s5, %s724_s6  }
  0x20   : > { %s589_s9 = scalar_lea.vmem %s170_s29, 32  ;;  %p597_p10 = scmp.lt.s32.totalorder %s170_s29, %s170_s29 }
  0x21   : > { %p590_p9 = scmp.ne.s32.totalorder %s170_s29, %s589_s9  ;;  %p598_p6 = scmp.lt.s32.totalorder %s589_s9, %s589_s9 }
  0x23   : > { %p592_p13 = pnand %p590_p9, %p565_p12  ;;  %p599_p3 = por %p598_p6, %p597_p10 }
  0x25   : > { %p593_p0 = pneg %p592_p13 }
  0x27   : > { %p600_p5 = pnand %p599_p3, %p593_p0 }
  0x29   : > { %603 = shalt.err (!%p600_p5)
}
  0x2a   : > { %s725_s10 = smov [#allocation8]   ;;  %s33_s11 = sadd.s32 1, %s716_s16 }
  0x2b   : > { %494 = dma.vmem_to_smem (!%p816_p11), %s170_s29, 32, %s725_s10, [#allocation5]  }
  0x2c   : > { %s42_s18 = sadd.s32 1, %s708_s14  ;;  %p35_p12 = scmp.ge.s32.totalorder %s33_s11, 2 }
  0x2d   : > { %p49_p7 = scmp.ne.s32.totalorder %s708_s14, %s704_s13  ;;  %p50_p9 = scmp.eq.s32.totalorder %s720_s17, 0 }
  0x2e   : > { %p505_p13 = scmp.lt.s32.totalorder %s720_s17, 2  ;;  %s987_s11 = smov (%p35_p12, %s33_s11), 0 }
  0x2f   : > { %p51_p0 = por %p50_p9, %p49_p7  ;;  %p848_p10 = por %p788_p2, %p49_p7 }
  0x30   : > { %s37_s25 = ssub.s32 %s716_s16, %s987_s11  ;;  %s180_s26 = sand.u32 1, %s708_s14  }
  0x31   : > { %p40_p6 = scmp.eq.s32.totalorder %s37_s25, 0  ;;  %s441_s27 = sshll.u32 %s180_s26, 3 }
  0x32   : > { %s474_s28 = sshll.u32 %s716_s16, 7  ;;  %s184_s8 = scalar_lea.vmem [#allocation2], %s441_s27 }
  0x33   : > { %s857_s29 = scalar_select %p40_p6, %s708_s14, %s42_s18  }
  0x34   : > { %s191_s7 = scalar_lea.hbm %s965_s0, %s474_s28  ;;  %s192_s9 = sshll.u32 %s184_s8, 4  ;;  %s193_s9 = int_to_ptr.vmem [resolvable:$true] %s192_s9 }
  0x35   : > { %p864_p11 = pnand %p505_p13, %p51_p0  ;;  %s181_s10 = scalar_lea.sflag [#allocation3], %s180_s26 }
  0x36   : > { %s617_s25 = scalar_lea.vmem %s193_s9, 128  ;;  %s726_s18 = smov [#allocation2]  }
  0x37   : > { %p606_p2 = pneg %p864_p11  ;;  %p618_p3 = scmp.ne.s32.totalorder %s193_s9, %s617_s25 }
  0x38   : > { %s622_s5 = sshll.u32 %s726_s18, 4  ;;  %s623_s5 = int_to_ptr.vmem [resolvable:$false] %s622_s5 }
  0x39   : > { %p620_p5 = pnand %p618_p3, %p606_p2  ;;  %s624_s28 = scalar_lea.vmem %s623_s5, 256 }
  0x3a   : > { %p625_p7 = scmp.lt.s32.totalorder %s193_s9, %s623_s5  ;;  %p626_p9 = scmp.lt.s32.totalorder %s624_s28, %s617_s25 }
  0x3b   : > { %p621_p12 = pneg %p620_p5 }
  0x3c   : > { %p627_p6 = por %p626_p9, %p625_p7 }
  0x3e   : > { %p628_p13 = pnand %p627_p6, %p621_p12 }
  0x40   : > { %631 = shalt.err (!%p628_p13)
}
  0x41   : > { %s978_s27 = smov 32   ;;  %204 = sbr.rel (%p804_p8) target bundleno = 120 (0x78), region = 32 }
  0x42   : > { %498 = dma.hbm_to_vmem [thread:$0]  (!%p864_p11), %s191_s7, 128, %s193_s9, %s181_s10, %s978_s27, %s978_s27, %s724_s6  }
  0x43   : > { %s878_s26 = sand.u32 (!%p804_p8), 1, %s704_s13  }
  0x44   : > { %s445_s5 = sshll.u32 (!%p804_p8), %s878_s26, 3  ;;  %s207_s30 = scalar_lea.sflag (!%p804_p8), [#allocation3], %s878_s26 }
  0x45   : > { %s882_s4 = scalar_lea.vmem (!%p804_p8), [#allocation2], %s445_s5 }
  0x46   : > { %683 = dma.done.wait (%p794_p4), %s207_s30, 128  }
  0x47   : > { %685 = vsyncadd (%p794_p4), %s207_s30, 4294967168 }
  0x48   : > { %687 = dma.done.wait (%p784_p1), [#allocation7], 64  }
  0x49   : > { %689 = vsyncadd (%p784_p1), [#allocation7], 4294967232 }
  0x4a   : > { %691 = dma.done.wait (%p784_p1), [#allocation5], 32  }
  0x4b   : > { %693 = vsyncadd (%p784_p1), [#allocation5], 4294967264 }
  0x4c   : > { %223 = sfence }
  0x4d   : > { %s449_s24 = sld [smem:[#allocation8 + $0x4]]  ;;  %v242_v0 = vld [vmem:[#allocation6] sm:$0x3]  ;;  %v244_v1 = vld [vmem:[#allocation6 + $0x2] sm:$0x3]  ;;  %s448_s30 = sshll.u32 %s878_s26, 2 }
  0x4e   : > { %s450_s6 = sld [smem:[#allocation8 + $0x5]]  ;;  %v256_v5 = vld [vmem:[%s882_s4] sm:$0x3]  ;;  %v453_v9 = vld [vmem:[%s882_s4 + $0x2] sm:$0x3] }
  0x4f   : > { %s451_s7 = sld [smem:[#allocation8 + $0x6]]  ;;  %v455_v13 = vld [vmem:[%s882_s4 + $0x4] sm:$0x3]  ;;  %v457_v17 = vld [vmem:[%s882_s4 + $0x6] sm:$0x3] }
  0x50   : > { %s255_s22 = sld [smem:[#allocation8]]  ;;  %v290_v24 = vld [vmem:[%s882_s4] sm:$0x3]  ;;  %v463_v30 = vld [vmem:[%s882_s4 + $0x2] sm:$0x3] }
  0x51   : > { %s452_s8 = sld [smem:[#allocation8 + $0x1]]  ;;  %v465_v35 = vld [vmem:[%s882_s4 + $0x4] sm:$0x3]  ;;  %v467_v40 = vld [vmem:[%s882_s4 + $0x6] sm:$0x3] }
  0x52   : > { %s454_s9 = sld [smem:[#allocation8 + $0x2]] }
  0x53   : > { %v246_v2 = vstv %s449_s24  ;;  %s896_s21 = sld [smem:[#allocation8 + $0x3]]  ;;  %s241_s24 = scalar_lea.vmem [#allocation9], %s448_s30 }
  0x54   : > { %v247_v3 = vmul.f32 %v246_v2, %v242_v0  ;;  %v249_v4 = vstv %s450_s6  ;;  %s458_s20 = sld [smem:[#allocation8 + $0x84]]  ;;  %s326_s6 = sshll.u32 %s241_s24, 4  ;;  %s912_s6 = int_to_ptr.vmem [resolvable:$true] %s326_s6 }
  0x55   : > { %v250_v6 = vmul.f32 %v249_v4, %v244_v1  ;;  %s459_s10 = sld [smem:[#allocation8 + $0x85]]  ;;  %v253_v7 = vstv %s451_s7  ;;  %s475_s7 = sshll.u32 %s712_s15, 6 }
  0x56   : > { %v257_v8 = vstv %s255_s22  ;;  %s900_s25 = sld [smem:[#allocation8 + $0x86]]  ;;  %s917_s4 = scalar_lea.hbm %s968_s3, %s475_s7 }
  0x57   : > { %v251_v10 = vadd.f32 %v250_v6, %v247_v3  ;;  %v258_v11 = vmul.f32 %v257_v8, %v256_v5  ;;  %v263_v12 = vstv %s452_s8  ;;  %s461_s18 = sld [smem:[#allocation8 + $0x80]]  ;;  %s727_s15 = smov [#allocation9]  }
  0x58   : > { %v269_v14 = vstv %s454_s9  ;;  %s462_s28 = sld [smem:[#allocation8 + $0x81]]  ;;  %v264_v16 = vmul.f32 %v453_v9, %v263_v12  ;;  %s312_s9 = scalar_lea.sflag [#allocation4], %s878_s26 }
  0x59   : > { %v254_v15 = vadd.f32 %v253_v7, %v251_v10  ;;  %s464_s27 = sld [smem:[#allocation8 + $0x82]]  ;;  %v275_v18 = vstv %s896_s21  ;;  %v270_v21 = vmul.f32 %v455_v13, %v269_v14  ;;  %s632_s21 = scalar_lea.vmem %s912_s6, 64 }
  0x5a   : > { %v280_v19 = vstv %s458_s20  ;;  %s466_s5 = sld [smem:[#allocation8 + $0x83]]  ;;  %v276_v27 = vmul.f32 %v457_v17, %v275_v18  ;;  %p633_p1 = scmp.ne.s32.totalorder %s912_s6, %s632_s21 }
  0x5b   : > { %v259_v20 = vadd.f32 %v258_v11, %v254_v15  ;;  %v281_v22 = vmul.f32 %v280_v19, %v242_v0  ;;  %v283_v23 = vstv %s459_s10  ;;  %s636_s20 = sshll.u32 %s727_s15, 4  ;;  %s637_s20 = int_to_ptr.vmem [resolvable:$false] %s636_s20 }
  0x5c   : > { %v284_v25 = vmul.f32 %v283_v23, %v244_v1  ;;  %v287_v28 = vstv %s900_s25  ;;  %p634_p4 = pnand %p633_p1, %p848_p10  ;;  %s638_s10 = scalar_lea.vmem %s637_s20, 128 }
  0x5d   : > { %v265_v26 = vadd.f32 %v264_v16, %v259_v20  ;;  %v291_v29 = vstv %s461_s18  ;;  %p639_p0 = scmp.lt.s32.totalorder %s912_s6, %s637_s20  ;;  %p640_p11 = scmp.lt.s32.totalorder %s638_s10, %s632_s21 }
  0x5e   : > { %v285_v31 = vadd.f32 %v284_v25, %v281_v22  ;;  %v292_v32 = vmul.f32 %v291_v29, %v290_v24  ;;  %v296_v33 = vstv %s462_s28  ;;  %p635_p8 = pneg %p634_p4 }
  0x5f   : > { %v271_v34 = vadd.f32 %v270_v21, %v265_v26  ;;  %v301_v36 = vstv %s464_s27  ;;  %v297_v38 = vmul.f32 %v463_v30, %v296_v33  ;;  %p641_p2 = por %p640_p11, %p639_p0 }
  0x60   : > { %v288_v37 = vadd.f32 %v287_v28, %v285_v31  ;;  %v306_v41 = vstv %s466_s5  ;;  %v302_v43 = vmul.f32 %v465_v35, %v301_v36 }
  0x61   : > { %v277_v39 = vadd.f32 %v276_v27, %v271_v34  ;;  %v307_v45 = vmul.f32 %v467_v40, %v306_v41  ;;  %p642_p3 = pnand %p641_p2, %p635_p8 }
  0x62   : > { %v293_v42 = vadd.f32 %v292_v32, %v288_v37 }
  0x63   : > { %278 = vst [vmem:[%s241_s24] sm:$0x3] %v277_v39 }
  0x64   : > { %v298_v44 = vadd.f32 %v297_v38, %v293_v42 }
  0x66   : > { %v303_v46 = vadd.f32 %v302_v43, %v298_v44 }
  0x68   : > { %v308_v47 = vadd.f32 %v307_v45, %v303_v46 }
  0x6a   : > { %468 = vst [vmem:[%s241_s24 + $0x2] sm:$0x3] %v308_v47 }
  0x6b   : > { %645 = shalt.err (!%p642_p3)
}
  0x6c   : > { %s646_s25 = scalar_lea.hbm %s917_s4, 64  ;;  %s650_s27 = scalar_lea.hbm %s968_s3, 128 }
  0x6d   : > { %p647_p5 = scmp.ne.s32.totalorder %s917_s4, %s646_s25  ;;  %p651_p9 = scmp.lt.s32.totalorder %s917_s4, %s968_s3 }
  0x6e   : > { %p652_p6 = scmp.lt.s32.totalorder %s650_s27, %s646_s25 }
  0x6f   : > { %p648_p12 = pnand %p647_p5, %p848_p10 }
  0x70   : > { %p653_p13 = por %p652_p6, %p651_p9 }
  0x71   : > { %p649_p7 = pneg %p648_p12 }
  0x73   : > { %p654_p1 = pnand %p653_p13, %p649_p7 }
  0x75   : > { %657 = shalt.err (!%p654_p1)
}
  0x76   : > { %s728_s24 = smov 32   ;;  %s729_s7 = smov 2  }
  0x77   : > { %486 = dma.vmem_to_hbm [thread:$0]  (%p848_p10), %s912_s6, 64, %s917_s4, %s312_s9, %s728_s24, %s728_s24, %s729_s7  }
  0x78 PF: > { %s341_s22 = sand.u32 1, %s700_s12   ;;  %p979_p4 = scmp.ne.s32.totalorder %s973_s23, 0 }
  0x79   : > { %p980_p8 = scmp.ge.s32.totalorder %s720_s17, 2  ;;  %s342_s8 = scalar_lea.sflag [#allocation4], %s341_s22 }
  0x7b   : > { %p500_p0 = pnand %p980_p8, %p979_p4 }
  0x7d   : > { %p501_p11 = pneg %p500_p0 }
  0x7f   : > { %695 = dma.done.wait (%p501_p11), %s342_s8, 64  }
  0x80   : > { %697 = vsyncadd (%p501_p11), %s342_s8, 4294967232  ;;  %s21_s17 = sadd.s32 1, %s720_s17   ;;  %s981_s12 = smov %s704_s13 }
  0x81   : > { %p18_p2 = scmp.ge.s32.totalorder %s21_s17, 4   ;;  %s982_s13 = smov %s708_s14 }
  0x82   : > { %s983_s14 = smov %s857_s29  ;;  %s984_s15 = smov %s716_s16 }
  0x83   : > { %s985_s16 = smov %s987_s11  ;;  %20 = sbr.rel (!%p18_p2) target bundleno = 8 (0x8), region = 92 }
  0x88   :  { %347 = vsyncpa [#allocation3], 1 }
  0x89   :  { %349 = vsyncpa [#allocation3 + $0x1], 1 }
  0x8a   :  { %350 = vsyncpa [#allocation7], 1 }
  0x8b   :  { %351 = vsyncpa [#allocation4], 1 }
  0x8c   :  { %353 = vsyncpa [#allocation4 + $0x1], 1 }
  0x8d   :  { %354 = vsyncpa [#allocation5], 1 }
  0x8e   :  { %356 = vsyncpa [#allocation5 + $0x1], 1 }

</bundles_post_ra>
